<compile_context>
chip_gen: v7x
topology: tpu7x:2x2x1
jax: 0.10.0
libtpu: 0.0.40
codegen_flags: <defaults>
</compile_context>

<pallas_src>
import functools

import jax
import jax.numpy as jnp
from jax.experimental import pallas as pl
from jax.experimental.pallas import tpu as pltpu


LANE = 128      # TPU lane width: keep the output store lane-dense
SUBLANE = 8     # f32 sublane height: pad the batch axis to a multiple of this


def _round_up(n, m):
    return ((n + m - 1) // m) * m


# -----------------------------------------------------------------------------
# Kernel 1: small-batch act() path — gridless, fused MLP + argmax.
# -----------------------------------------------------------------------------
def _act_kernel(n_actions, x_ref, w1_ref, b1_ref, w2_ref, b2_ref, q_ref, act_ref):
    x = x_ref[...]                                                     # (Bp, in)
    h = jnp.tanh(
        jnp.dot(x, w1_ref[...], preferred_element_type=jnp.float32) + b1_ref[...]
    )                                                                  # (Bp, H)
    q = jnp.dot(h, w2_ref[...], preferred_element_type=jnp.float32) + b2_ref[...]
    q_ref[...] = q                                                     # (Bp, 128) lane-dense store

    # Fused action selection: argmax over the *real* action columns only
    # (the zero-padded columns are masked out). Implemented as max +
    # first-index-of-max so everything stays 2D / keepdims.
    col = jax.lax.broadcasted_iota(jnp.int32, q.shape, 1)              # (Bp, 128)
    neg = jnp.finfo(jnp.float32).min
    q_valid = jnp.where(col < n_actions, q, neg)
    row_max = jnp.max(q_valid, axis=1, keepdims=True)                  # (Bp, 1)
    idx = jnp.where(q_valid >= row_max, col, jnp.int32(LANE))
    act_ref[...] = jnp.min(idx, axis=1, keepdims=True)                 # (Bp, 1) int32


def agent_act(x, w1, b1, w2, b2):
    """Agent.act() hot path: Q-values + greedy action in a single kernel launch."""
    B, in_features = x.shape
    hidden = w1.shape[1]
    n_actions = w2.shape[1]

    # Fixed sublane-aligned batch bucket (avoids half-empty vregs and
    # per-batch-size recompiles for B in 1..8).
    Bp = _round_up(max(B, 1), SUBLANE)
    x_p = jnp.pad(x, ((0, Bp - B), (0, 0)))
    # Lane-dense output: zero-pad the second layer to 128 output columns.
    w2_p = jnp.pad(w2, ((0, 0), (0, LANE - n_actions)))
    b2_p = jnp.pad(b2, ((0, 0), (0, LANE - n_actions)))

    cost = pl.CostEstimate(
        flops=2 * Bp * (in_features * hidden + hidden * LANE),
        transcendentals=Bp * hidden,
        bytes_accessed=4 * (x_p.size + w1.size + b1.size + w2_p.size + b2_p.size
                            + Bp * LANE + Bp),
    )

    vmem = pl.BlockSpec(memory_space=pltpu.MemorySpace.VMEM)
    q_p, act_p = pl.pallas_call(
        functools.partial(_act_kernel, n_actions),
        out_shape=(
            jax.ShapeDtypeStruct((Bp, LANE), jnp.float32),
            jax.ShapeDtypeStruct((Bp, 1), jnp.int32),
        ),
        in_specs=[vmem] * 5,
        out_specs=(vmem, vmem),
        cost_estimate=cost,
    )(x_p, w1, b1, w2_p, b2_p)

    return q_p[:B, :n_actions], act_p[:B, 0]


# -----------------------------------------------------------------------------
# Kernel 2: replay-batch forward — tiled over B, weights VMEM-resident.
# -----------------------------------------------------------------------------
def _batched_kernel(x_ref, w1_ref, b1_ref, w2_ref, b2_ref, q_ref):
    h = jnp.tanh(
        jnp.dot(x_ref[...], w1_ref[...], preferred_element_type=jnp.float32)
        + b1_ref[...]
    )
    q_ref[...] = (
        jnp.dot(h, w2_ref[...], preferred_element_type=jnp.float32) + b2_ref[...]
    )


def agent_forward_batched(x, w1, b1, w2, b2, *, block_b=512):
    """Q-values for a (large) replay batch; returns (B, n_actions)."""
    B, in_features = x.shape
    hidden = w1.shape[1]
    n_actions = w2.shape[1]

    block_b = min(block_b, _round_up(B, SUBLANE))   # multiple of 8 by construction
    Bp = _round_up(B, block_b)
    x_p = jnp.pad(x, ((0, Bp - B), (0, 0)))
    w2_p = jnp.pad(w2, ((0, 0), (0, LANE - n_actions)))
    b2_p = jnp.pad(b2, ((0, 0), (0, LANE - n_actions)))

    cost = pl.CostEstimate(
        flops=2 * Bp * (in_features * hidden + hidden * LANE),
        transcendentals=Bp * hidden,
        bytes_accessed=4 * (x_p.size + w1.size + b1.size + w2_p.size + b2_p.size
                            + Bp * LANE),
    )

    q_p = pl.pallas_call(
        _batched_kernel,
        out_shape=jax.ShapeDtypeStruct((Bp, LANE), jnp.float32),
        grid=(Bp // block_b,),
        in_specs=[
            pl.BlockSpec((block_b, in_features), lambda i: (i, 0)),   # stream x tiles
            pl.BlockSpec((in_features, hidden), lambda i: (0, 0)),    # weights stay resident
            pl.BlockSpec((1, hidden), lambda i: (0, 0)),
            pl.BlockSpec((hidden, LANE), lambda i: (0, 0)),
            pl.BlockSpec((1, LANE), lambda i: (0, 0)),
        ],
        out_specs=pl.BlockSpec((block_b, LANE), lambda i: (i, 0)),
        compiler_params=pltpu.CompilerParams(
            dimension_semantics=("parallel",)),      # shards B across v7x's 2 TCs
        cost_estimate=cost,
    )(x_p, w1, b1, w2_p, b2_p)

    return q_p[:B, :n_actions]


# -----------------------------------------------------------------------------
# Param init (nn.Linear-style U(-1/sqrt(fan_in), 1/sqrt(fan_in)))
# -----------------------------------------------------------------------------
def init_params(key, in_features=4, hidden=64, n_actions=2):
    k1, k2, k3, k4 = jax.random.split(key, 4)
    bound1 = 1.0 / jnp.sqrt(in_features)
    bound2 = 1.0 / jnp.sqrt(hidden)
    w1 = jax.random.uniform(k1, (in_features, hidden), jnp.float32, -bound1, bound1)
    b1 = jax.random.uniform(k2, (1, hidden), jnp.float32, -bound1, bound1)
    w2 = jax.random.uniform(k3, (hidden, n_actions), jnp.float32, -bound2, bound2)
    b2 = jax.random.uniform(k4, (1, n_actions), jnp.float32, -bound2, bound2)
    return w1, b1, w2, b2


if __name__ == "__main__":
    key = jax.random.PRNGKey(0)
    key_x, key_p, key_xb = jax.random.split(key, 3)

    # CartPole-v0: observation dim = 4, action dim = 2.
    B, in_features, hidden, n_actions = 2, 4, 64, 2
    x = jax.random.normal(key_x, (B, in_features), jnp.float32)
    w1, b1, w2, b2 = init_params(key_p, in_features, hidden, n_actions)

    # --- act() path: fused forward + argmax, single kernel launch ---
    q_values, actions = agent_act(x, w1, b1, w2, b2)
    q_values = jax.block_until_ready(q_values)
    actions = jax.block_until_ready(actions)

    ref = jnp.tanh(x @ w1 + b1) @ w2 + b2
    assert q_values.shape == (B, n_actions)
    assert jnp.allclose(q_values, ref, atol=1e-5, rtol=1e-5)
    assert jnp.array_equal(actions, jnp.argmax(ref, axis=1).astype(jnp.int32))

    # --- replay-batch path: B-tiled forward with resident weights ---
    Bb = 128
    xb = jax.random.normal(key_xb, (Bb, in_features), jnp.float32)
    qb = agent_forward_batched(xb, w1, b1, w2, b2, block_b=64)
    qb = jax.block_until_ready(qb)

    ref_b = jnp.tanh(xb @ w1 + b1) @ w2 + b2
    assert qb.shape == (Bb, n_actions)
    assert jnp.allclose(qb, ref_b, atol=1e-5, rtol=1e-5)

    # TODO(synk): gym env stepping / replay buffer / epsilon-greedy sampling are
    # host-side control flow in the original script, not kernel work.
    print("KERNEL_OK")
</pallas_src>

<mosaic_0001>
module attributes {stable_mosaic.version = 11 : i64} {
  func.func @_act_kernel(%arg0: memref<8x4xf32, #tpu.memory_space<vmem>>, %arg1: memref<4x64xf32, #tpu.memory_space<vmem>>, %arg2: memref<1x64xf32, #tpu.memory_space<vmem>>, %arg3: memref<64x128xf32, #tpu.memory_space<vmem>>, %arg4: memref<1x128xf32, #tpu.memory_space<vmem>>, %arg5: memref<8x128xf32, #tpu.memory_space<vmem>>, %arg6: memref<8x1xi32, #tpu.memory_space<vmem>>) attributes {dimension_semantics = [], scalar_prefetch = 0 : i64, scratch_operands = 0 : i64, tpu.core_type = #tpu.core_type<tc>} {
    %c0 = arith.constant 0 : index
    %c0_0 = arith.constant 0 : index
    %0 = vector.load %arg0[%c0, %c0_0] : memref<8x4xf32, #tpu.memory_space<vmem>>, vector<8x4xf32>
    %c0_1 = arith.constant 0 : index
    %c0_2 = arith.constant 0 : index
    %1 = vector.load %arg1[%c0_1, %c0_2] : memref<4x64xf32, #tpu.memory_space<vmem>>, vector<4x64xf32>
    %cst = arith.constant dense<0.000000e+00> : vector<8x64xf32>
    %2 = tpu.matmul %0, %1, %cst {dimension_numbers = #tpu.dot_dimension_numbers<[1], [0], [0], [1], [0, 0, 1, 1], [], []>} : vector<8x4xf32>, vector<4x64xf32>, vector<8x64xf32> -> vector<8x64xf32>
    %c0_3 = arith.constant 0 : index
    %c0_4 = arith.constant 0 : index
    %3 = vector.load %arg2[%c0_3, %c0_4] : memref<1x64xf32, #tpu.memory_space<vmem>>, vector<1x64xf32>
    %4 = vector.broadcast %3 : vector<1x64xf32> to vector<8x64xf32>
    %5 = arith.addf %2, %4 : vector<8x64xf32>
    %6 = math.tanh %5 : vector<8x64xf32>
    %c0_5 = arith.constant 0 : index
    %c0_6 = arith.constant 0 : index
    %7 = vector.load %arg3[%c0_5, %c0_6] : memref<64x128xf32, #tpu.memory_space<vmem>>, vector<64x128xf32>
    %cst_7 = arith.constant dense<0.000000e+00> : vector<8x128xf32>
    %8 = tpu.matmul %6, %7, %cst_7 {dimension_numbers = #tpu.dot_dimension_numbers<[1], [0], [0], [1], [0, 0, 1, 1], [], []>} : vector<8x64xf32>, vector<64x128xf32>, vector<8x128xf32> -> vector<8x128xf32>
    %c0_8 = arith.constant 0 : index
    %c0_9 = arith.constant 0 : index
    %9 = vector.load %arg4[%c0_8, %c0_9] : memref<1x128xf32, #tpu.memory_space<vmem>>, vector<1x128xf32>
    %10 = vector.broadcast %9 : vector<1x128xf32> to vector<8x128xf32>
    %11 = arith.addf %8, %10 : vector<8x128xf32>
    %c0_10 = arith.constant 0 : index
    %c0_11 = arith.constant 0 : index
    %12 = vector.load %arg5[%c0_10, %c0_11] : memref<8x128xf32, #tpu.memory_space<vmem>>, vector<8x128xf32>
    tpu.vector_store %arg5[%c0_10, %c0_11], %11 {strides = array<i32>} : memref<8x128xf32, #tpu.memory_space<vmem>>, vector<8x128xf32>,
    %13 = tpu.iota {dimensions = array<i32: 1>} : vector<8x128xi32>
    %c2_i32 = arith.constant 2 : i32
    %14 = vector.broadcast %c2_i32 : i32 to vector<8x128xi32>
    %15 = arith.cmpi slt, %13, %14 : vector<8x128xi32>
    %cst_12 = arith.constant -3.40282347E+38 : f32
    %16 = vector.broadcast %cst_12 : f32 to vector<8x128xf32>
    %17 = arith.select %15, %11, %16 : vector<8x128xi1>, vector<8x128xf32>
    %cst_13 = arith.constant dense<0xFF800000> : vector<8xf32>
    %18 = vector.multi_reduction <maximumf>, %17, %cst_13 [1] : vector<8x128xf32> to vector<8xf32>
    %19 = vector.shape_cast %18 : vector<8xf32> to vector<8x1xf32>
    %20 = vector.broadcast %19 : vector<8x1xf32> to vector<8x128xf32>
    %21 = arith.cmpf oge, %17, %20 : vector<8x128xf32>
    %c128_i32 = arith.constant 128 : i32
    %22 = vector.broadcast %c128_i32 : i32 to vector<8x128xi32>
    %23 = arith.select %21, %13, %22 : vector<8x128xi1>, vector<8x128xi32>
    %cst_14 = arith.constant dense<2147483647> : vector<8xi32>
    %24 = vector.multi_reduction <minsi>, %23, %cst_14 [1] : vector<8x128xi32> to vector<8xi32>
    %25 = vector.shape_cast %24 : vector<8xi32> to vector<8x1xi32>
    %c0_15 = arith.constant 0 : index
    %c0_16 = arith.constant 0 : index
    %26 = vector.load %arg6[%c0_15, %c0_16] : memref<8x1xi32, #tpu.memory_space<vmem>>, vector<8x1xi32>
    tpu.vector_store %arg6[%c0_15, %c0_16], %25 {strides = array<i32>} : memref<8x1xi32, #tpu.memory_space<vmem>>, vector<8x1xi32>,
    return
  }
}

</mosaic_0001>

<bundles_post_ra>
// kernel: tpu_custom_call.1
= control target key start
LH: loop header
LB: loop body
LE: loop exit
PB: predicated region body
PF: predicated region fallthrough
CT: control target
= control target key end

     0   :  { %12 = vsyncpa [#allocation3], 0  ;;  %s448_s0 = inlined_call_operand.vmem [shape: f32[8,4], index: 0, kind: input, shape index: {}]   ;;  %s449_s1 = inlined_call_operand.vmem [shape: f32[4,64], index: 1, kind: input, shape index: {}]   ;;  %s450_s2 = inlined_call_operand.vmem [shape: f32[1,64], index: 2, kind: input, shape index: {}]   ;;  %s451_s3 = inlined_call_operand.hbm [shape: f32[64,128], index: 3, kind: input, shape index: {}]   ;;  %s452_s4 = inlined_call_operand.vmem [shape: f32[1,128], index: 4, kind: input, shape index: {}]   ;;  %s453_s5 = inlined_call_operand.hbm [shape: f32[8,128], index: 5, kind: output, shape index: {0}]   ;;  %s454_s6 = inlined_call_operand.vmem [shape: s32[8,1], index: 6, kind: output, shape index: {1}]  }
   0x1   :  { %13 = vsyncpa [#allocation4], 0  ;;  %s367_s21 = smov [#allocation2]   ;;  %s319_s25 = scalar_lea.hbm %s451_s3, 1024 }
   0x2   :  { %s25_s22 = sshll.u32 %s367_s21, 4  ;;  %p320_p0 = scmp.ne.s32.totalorder %s451_s3, %s319_s25  ;;  %s26_s22 = int_to_ptr.vmem [resolvable:$true] %s25_s22 }
   0x3   :  { %p323_p1 = scmp.lt.u32.totalorder %s319_s25, %s451_s3 }
   0x5   :  { %p325_p2 = pnand %p323_p1, %p320_p0 }
   0x7   :  { %328 = shalt.err (!%p325_p2)
}
   0x8   :  { %s329_s30 = scalar_lea.vmem %s26_s22, 1024  ;;  %p334_p4 = scmp.lt.s32.totalorder %s26_s22, %s26_s22 }
   0x9   :  { %p330_p3 = scmp.ne.s32.totalorder %s26_s22, %s329_s30  ;;  %p335_p5 = scmp.lt.s32.totalorder %s329_s30, %s329_s30 }
   0xb   :  { %p336_p6 = por %p335_p5, %p334_p4 }
   0xd   :  { %p337_p7 = pnand %p336_p6, %p330_p3 }
   0xf   :  { %340 = shalt.err (!%p337_p7)
}
  0x10   :  { %s368_s7 = smov 128   ;;  %s369_s8 = smov 8  }
  0x11   :  { %31 = dma.hbm_to_vmem [thread:$0]  %s451_s3, 1024, %s26_s22, [#allocation3], %s368_s7, %s368_s7, %s369_s8  }
  0x12   :  { %363 = dma.done.wait [#allocation3], 1024  }
  0x13   :  { %364 = vsyncadd [#allocation3], 4294966272  ;;  %v370_v0 = vmov 0.0   ;;  %vm371_vm0 = vmmov 0   ;;  %v372_v1 = vmov 0.0|0.0   ;;  %vm50_vm1 = vcmask 1043456  }
  0x14   :  { %274 = vmatprep.subr.mxu0 %v370_v0  ;;  %276 = vmatprep.mubr.msk.f32.mxu0 %vm371_vm0, %v370_v0  ;;  %vm46_vm2 = vcmask 31744   ;;  %v38_v2 = vld [vmem:[%s449_s1] sm:$0xf]  ;;  %v126_v5 = vld [vmem:[#allocation2 + $0x8] sm:$0xff]  ;;  %v127_v7 = vld [vmem:[#allocation2 + $0x10] sm:$0xff]  ;;  %vm140_vm3 = vcmask 523264   ;;  %v215_v21 = vlaneseq }
  0x15   :  { %298 = vmatprep.subr.bf16.mxu1 %v372_v1  ;;  %295 = vmatprep.mubr.msk.f32.mxu1 %vm371_vm0, %v370_v0  ;;  %v37_v3 = vld [vmem:[%s448_s0] sm:$0xff]  ;;  %v128_v8 = vld [vmem:[#allocation2 + $0x18] sm:$0xff]  ;;  %v130_v11 = vld [vmem:[#allocation2 + $0x28] sm:$0xff] }
  0x16   :  { %v125_v4 = vld [vmem:[#allocation2] sm:$0xff]  ;;  %275 = vmatpush3.msk.msra.mxu0 %vm50_vm1, %v38_v2  ;;  %v302_v9 = vpack.c.bf16 %v128_v8, %v127_v7  ;;  %v131_v13 = vld [vmem:[#allocation2 + $0x30] sm:$0xff]  ;;  %v132_v14 = vld [vmem:[#allocation2 + $0x38] sm:$0xff]  ;;  %v216_v22 = vand.u32 127, %v215_v21 }
  0x17   :  { %277 = vmatmul.mubr.msk.f32.vlgmr.msra.gmra.mrb[0].mxu0 %vm46_vm2, %v37_v3  ;;  %v299_v6 = vpack.c.bf16 %v126_v5, %v125_v4  ;;  %v129_v10 = vld [vmem:[#allocation2 + $0x20] sm:$0xff]  ;;  %v308_v15 = vpack.c.bf16 %v132_v14, %v131_v13 }
  0x18   :  { %v305_v12 = vpack.c.bf16 %v130_v11, %v129_v10  ;;  %v258_v16 = vld [vmem:[%s450_s2] ss:$0 sm:$0xff]  ;;  %vm217_vm4 = vcmp.lt.s32.totalorder %v216_v22, 2  ;;  %s373_s2 = smov [#allocation5]  }
  0x19   :  { %300 = vmatpush3.bf16.msra.mxu1 %v299_v6  ;;  %v261_v23 = vld [vmem:[%s452_s4] ss:$0 sm:$0xff]  ;;  %s245_s4 = sshll.u32 %s373_s2, 4  ;;  %s246_s4 = int_to_ptr.vmem [resolvable:$true] %s245_s4 }
  0x1a   :  { %301 = vmatprep.subr.bf16.mxu1 %v372_v1  ;;  %s341_s16 = scalar_lea.vmem %s246_s4, 128  ;;  %p346_p9 = scmp.lt.s32.totalorder %s246_s4, %s246_s4 }
  0x1b   :  { %p342_p8 = scmp.ne.s32.totalorder %s246_s4, %s341_s16  ;;  %p347_p10 = scmp.lt.s32.totalorder %s341_s16, %s341_s16 }
  0x1d   :  { %303 = vmatpush3.bf16.msra.mxu1 %v302_v9  ;;  %p348_p11 = por %p347_p10, %p346_p9 }
  0x1e   :  { %304 = vmatprep.subr.bf16.mxu1 %v372_v1 }
  0x1f   :  { %p349_p12 = pnand %p348_p11, %p342_p8 }
  0x21   :  { %306 = vmatpush3.bf16.msra.mxu1 %v305_v12 }
  0x22   :  { %307 = vmatprep.subr.bf16.mxu1 %v372_v1 }
  0x25   :  { %309 = vmatpush3.bf16.msra.mxu1 %v308_v15 }
  0xea   :  { %v120_v17 = vpop.f32.mrb[0].mxu0 }
  0xeb   :  { %v121_v18 = vadd.f32 %v258_v16, %v120_v17  ;;  %v278_v19 = vpop.f32.mrb[1].mxu0 }
  0xed   :  { %317 = vtanh.f32 %v121_v18 }
  0xf7   :  { %v318_v20 = vpop.eup %317 }
  0xf8   :  { %296 = vmatmul.mubr.msk.f32.vlgmr.msra.gmra.mrb[0].mxu1 %vm140_vm3, %v318_v20 }
 0x1cb   :  { %v210_v24 = vpop.f32.mrb[0].mxu1 }
 0x1cc   :  { %v211_v25 = vadd.f32 %v261_v23, %v210_v24  ;;  %v297_v26 = vpop.f32.mrb[1].mxu1 }
 0x1ce   :  { %214 = vst [vmem:[#allocation5] sm:$0xff] %v211_v25  ;;  %v218_v27 = vsel %vm217_vm4, %v211_v25, -3.4028235e+38 }
 0x1cf   :  { %219 = vmax.xlane.f32.xlu0 %v218_v27 }
 0x25c   :  { %v220_v28 = vpop.xlane.xlu0 %219 }
 0x25d   :  { %vm221_vm5 = vcmp.ge.f32.partialorder %v218_v27, %v220_v28 }
 0x25e   :  { %v222_v29 = vsel %vm221_vm5, %v216_v22, 128 }
 0x25f   :  { %v224_v30 = vshra.s32 %v222_v29, 16  ;;  %v223_v32 = vand.u32 65535, %v222_v29 }
 0x261   :  { %v226_v31 = vcvt.s32.f32 %v224_v30  ;;  %v225_v34 = vcvt.s32.f32 %v223_v32 }
 0x263   :  { %227 = vmin.xlane.f32.xlu0 %v226_v31 }
 0x2f0   :  { %v228_v33 = vpop.xlane.xlu0 %227 }
 0x2f1   :  { %vm229_vm6 = vcmp.eq.f32.partialorder %v226_v31, %v228_v33 }
 0x2f2   :  { %v230_v35 = vsel %vm229_vm6, %v225_v34, inf }
 0x2f3   :  { %231 = vmin.xlane.f32.xlu1 %v230_v35 }
 0x2f4   :  { %352 = shalt.err (!%p349_p12)
}
 0x2f5   :  { %s353_s19 = scalar_lea.hbm %s453_s5, 128 }
 0x2f6   :  { %p354_p13 = scmp.ne.s32.totalorder %s453_s5, %s353_s19  ;;  %p357_p0 = scmp.lt.u32.totalorder %s353_s19, %s453_s5 }
 0x2f8   :  { %p359_p1 = pnand %p357_p0, %p354_p13 }
 0x2fa   :  { %362 = shalt.err (!%p359_p1)
}
 0x2fb   :  { %248 = dma.vmem_to_hbm [thread:$0]  %s246_s4, 128, %s453_s5, [#allocation4]   ;;  %v234_v36 = vcvt.f32.s32 %v228_v33  ;;  %vm237_vm7 = vcmask 7168  }
 0x2fd   :  { %v235_v38 = vshll.u32 %v234_v36, 16 }
 0x380   :  { %v232_v37 = vpop.xlane.xlu1 %231 }
 0x381   :  { %v233_v39 = vcvt.f32.s32 %v232_v37 }
 0x383   :  { %v236_v40 = vadd.s32 %v235_v38, %v233_v39 }
 0x385   :  { %238 = vst.msk [vmem:[%s454_s6] sm:$0xff] %vm237_vm7, %v236_v40 }
 0x386   :  { %365 = dma.done.wait [#allocation4], 128  }
 0x387   :  { %366 = vsyncadd [#allocation4], 4294967168 }
 0x388   :  { %256 = vsyncpa [#allocation3], 1 }
 0x389   :  { %257 = vsyncpa [#allocation4], 1 }

</bundles_post_ra>
